<compile_context>
chip_gen: v6e
topology: v6e:2x2x1
jax: 0.10.0
libtpu: 0.0.40
codegen_flags: <defaults>
</compile_context>

<pallas_src>
import functools

import jax
import jax.numpy as jnp
from jax.experimental import pallas as pl
from jax.experimental.pallas import tpu as pltpu


def _round_up(x, m):
    return (x + m - 1) // m * m


# ------------------------------------------------------------------------------------
# Fused single-pass path: conv (one MXU matmul) + train-mode BN + ReLU.
# Conv output stays resident; the only HBM write is the channel-major packed result.
# ------------------------------------------------------------------------------------
def _fused_conv_bn_relu_kernel(p_ref, w_ref, gamma_ref, beta_ref, o_ref, *,
                               count, eps, coutp):
    y = jnp.dot(p_ref[...], w_ref[...], preferred_element_type=jnp.float32)   # (Mp, Cp)
    inv_count = 1.0 / count
    mean = jnp.sum(y, axis=0, keepdims=True) * inv_count                      # (1, Cp)
    var = jnp.sum(y * y, axis=0, keepdims=True) * inv_count - mean * mean
    var = jnp.maximum(var, 0.0)                 # guard E[y^2]-E[y]^2 cancellation
    scale = gamma_ref[...] * jax.lax.rsqrt(var + eps)                         # EUP rsqrt
    shift = beta_ref[...] - mean * scale
    z = jnp.maximum(y * scale + shift, 0.0)                                   # (Mp, Cp)
    # Channel-major, lane-dense packed store (XLU transpose; no Cout->128 dead lanes).
    o_ref[...] = jnp.transpose(z)[:coutp, :]                                  # (Coutp, Mp)


# ------------------------------------------------------------------------------------
# Pass 1 (fallback): im2col matmul per tile + per-tile partial BN stats.
# y intermediate is stored channel-major (Coutp, TM) in y_dtype (bf16 by default).
# ------------------------------------------------------------------------------------
def _conv_stats_kernel(p_ref, w_ref, y_ref, psum_ref, psq_ref, *, coutp):
    y = jnp.dot(p_ref[...], w_ref[...], preferred_element_type=jnp.float32)   # (TM, Cp)
    tm, cp = y.shape
    # Partial per-channel stats as 8 sublane group-sums (every row is useful data).
    y3 = y.reshape(tm // 8, 8, cp)
    psum_ref[...] = jnp.sum(y3, axis=0)                                       # (8, Cp)
    psq_ref[...] = jnp.sum(y3 * y3, axis=0)                                   # (8, Cp)
    # Raw conv output, channel-major packed, narrow dtype.
    y_ref[...] = jnp.transpose(y)[:coutp, :].astype(y_ref.dtype)              # (Coutp, TM)


# ------------------------------------------------------------------------------------
# Pass 2 (fallback): streaming per-channel affine (precomputed scale/shift) + ReLU.
# ------------------------------------------------------------------------------------
def _bn_relu_kernel(scale_ref, shift_ref, y_ref, o_ref):
    y = y_ref[...].astype(jnp.float32)
    o_ref[...] = jnp.maximum(y * scale_ref[...] + shift_ref[...], 0.0)


def conv_bn_relu(x_nchw, w_oihw, bias, gamma, beta, *, stride, padding, eps=1e-5,
                 tile_m=512, matmul_dtype=jnp.float32, y_dtype=jnp.bfloat16,
                 max_fused_vmem_bytes=20 * 1024 * 1024):
    # Conv bias is exactly cancelled by train-mode BatchNorm mean subtraction; drop it.
    # (Only valid for batch statistics; eval-mode running stats would need the bias.)
    del bias
    N, Cin, H, W = x_nchw.shape
    Cout, _, KH, KW = w_oihw.shape

    # NCHW -> NHWC, spatial pad (wrapper-side layout plumbing).
    x = jnp.transpose(x_nchw, (0, 2, 3, 1)).astype(jnp.float32)
    xp = jnp.pad(x, ((0, 0), (padding, padding), (padding, padding), (0, 0)))
    Hp, Wp = H + 2 * padding, W + 2 * padding
    Ho = (Hp - KH) // stride + 1
    Wo = (Wp - KW) // stride + 1

    # im2col patches (M, K), K = KH*KW*Cin, tap order (kh, kw, cin).
    # TODO(synk): for large Cin, feed taps via KH*KW BlockSpecs on the padded NHWC
    # tensor instead of materializing the KH*KW-duplicated patches array in HBM.
    taps = []
    for kh in range(KH):
        for kw in range(KW):
            taps.append(xp[:, kh:kh + (Ho - 1) * stride + 1:stride,
                           kw:kw + (Wo - 1) * stride + 1:stride, :])
    K = KH * KW * Cin
    M = N * Ho * Wo
    patches = jnp.concatenate(taps, axis=-1).reshape(M, K)

    Kp = _round_up(K, 128)                    # lane-dense contraction dim
    Cp = _round_up(Cout, 128)                 # matmul N dim (MXU-friendly)
    Coutp = _round_up(Cout, 8)                # packed output channel dim (sublanes)
    mm_size = jnp.dtype(matmul_dtype).itemsize

    w_flat = jnp.transpose(w_oihw, (2, 3, 1, 0)).reshape(K, Cout)   # (kh,kw,cin) x cout
    w_flat = jnp.pad(w_flat, ((0, Kp - K), (0, Cp - Cout))).astype(matmul_dtype)
    gamma_p = jnp.pad(gamma.astype(jnp.float32), (0, Cp - Cout))
    beta_p = jnp.pad(beta.astype(jnp.float32), (0, Cp - Cout))

    vmem_limit = 32 * 1024 * 1024

    Mp1 = _round_up(M, 128)
    fused_bytes = (2 * (Mp1 * Kp + Kp * Cp) * mm_size       # double-buffered matmul inputs
                   + 4 * 4 * Cp                              # gamma/beta
                   + 4 * 3 * Mp1 * Cp                        # f32 y/z temps (+ transpose)
                   + 4 * 2 * Coutp * Mp1)                    # output buffers

    if fused_bytes <= max_fused_vmem_bytes:
        # ---------------- fused single-pass path ----------------
        patches_p = jnp.pad(patches, ((0, Mp1 - M), (0, Kp - K))).astype(matmul_dtype)
        y_t = pl.pallas_call(
            functools.partial(_fused_conv_bn_relu_kernel, count=float(M),
                              eps=float(eps), coutp=Coutp),
            out_shape=jax.ShapeDtypeStruct((Coutp, Mp1), jnp.float32),
            grid_spec=pltpu.PrefetchScalarGridSpec(
                num_scalar_prefetch=0,
                grid=(1,),
                in_specs=[
                    pl.BlockSpec((Mp1, Kp), lambda i: (0, 0)),
                    pl.BlockSpec((Kp, Cp), lambda i: (0, 0)),
                    pl.BlockSpec((1, Cp), lambda i: (0, 0)),
                    pl.BlockSpec((1, Cp), lambda i: (0, 0)),
                ],
                out_specs=pl.BlockSpec((Coutp, Mp1), lambda i: (0, 0)),
            ),
            compiler_params=pltpu.CompilerParams(
                dimension_semantics=("arbitrary",),
                vmem_limit_bytes=vmem_limit),
            cost_estimate=pl.CostEstimate(
                flops=2 * Mp1 * Kp * Cp + 8 * Mp1 * Cp,
                transcendentals=Cp,
                bytes_accessed=mm_size * (Mp1 * Kp + Kp * Cp)
                + 4 * (2 * Cp + Coutp * Mp1)),
        )(patches_p, w_flat, gamma_p.reshape(1, Cp), beta_p.reshape(1, Cp))
        Mp = Mp1
    else:
        # ---------------- two-pass streaming fallback ----------------
        TM = min(_round_up(tile_m, 128), _round_up(M, 128))
        Mp = _round_up(M, TM)
        n_tiles = Mp // TM
        patches_p = jnp.pad(patches, ((0, Mp - M), (0, Kp - K))).astype(matmul_dtype)

        # Pass 1: conv (one matmul per tile), packed bf16 y, per-tile partial stats.
        y_conv, psum, psq = pl.pallas_call(
            functools.partial(_conv_stats_kernel, coutp=Coutp),
            out_shape=(
                jax.ShapeDtypeStruct((Coutp, Mp), y_dtype),
                jax.ShapeDtypeStruct((n_tiles * 8, Cp), jnp.float32),
                jax.ShapeDtypeStruct((n_tiles * 8, Cp), jnp.float32),
            ),
            grid_spec=pltpu.PrefetchScalarGridSpec(
                num_scalar_prefetch=0,
                grid=(n_tiles,),
                in_specs=[
                    pl.BlockSpec((TM, Kp), lambda t: (t, 0)),
                    pl.BlockSpec((Kp, Cp), lambda t: (0, 0)),
                ],
                out_specs=[
                    pl.BlockSpec((Coutp, TM), lambda t: (0, t)),
                    pl.BlockSpec((8, Cp), lambda t: (t, 0)),
                    pl.BlockSpec((8, Cp), lambda t: (t, 0)),
                ],
            ),
            compiler_params=pltpu.CompilerParams(
                dimension_semantics=("parallel",),
                vmem_limit_bytes=vmem_limit),
            cost_estimate=pl.CostEstimate(
                flops=2 * Mp * Kp * Cp,
                transcendentals=0,
                bytes_accessed=mm_size * (Mp * Kp + Kp * Cp)
                + jnp.dtype(y_dtype).itemsize * Coutp * Mp
                + 4 * 2 * n_tiles * 8 * Cp),
        )(patches_p, w_flat)

        # Tiny reduction + per-channel affine precompute (wrapper-side XLA, O(Cout)).
        inv_count = 1.0 / float(M)
        mean = jnp.sum(psum, axis=0) * inv_count
        var = jnp.maximum(jnp.sum(psq, axis=0) * inv_count - mean * mean, 0.0)
        scale = gamma_p * jax.lax.rsqrt(var + float(eps))
        shift = beta_p - mean * scale
        scale_t = jnp.broadcast_to(scale[:Coutp, None], (Coutp, TM))
        shift_t = jnp.broadcast_to(shift[:Coutp, None], (Coutp, TM))

        # Pass 2: streamed per-channel FMA + ReLU (scale/shift resident, (0,0) block).
        y_t = pl.pallas_call(
            _bn_relu_kernel,
            out_shape=jax.ShapeDtypeStruct((Coutp, Mp), jnp.float32),
            grid_spec=pltpu.PrefetchScalarGridSpec(
                num_scalar_prefetch=0,
                grid=(n_tiles,),
                in_specs=[
                    pl.BlockSpec((Coutp, TM), lambda t: (0, 0)),
                    pl.BlockSpec((Coutp, TM), lambda t: (0, 0)),
                    pl.BlockSpec((Coutp, TM), lambda t: (0, t)),
                ],
                out_specs=pl.BlockSpec((Coutp, TM), lambda t: (0, t)),
            ),
            compiler_params=pltpu.CompilerParams(
                dimension_semantics=("parallel",),
                vmem_limit_bytes=vmem_limit),
            cost_estimate=pl.CostEstimate(
                flops=3 * Coutp * Mp,
                transcendentals=0,
                bytes_accessed=(jnp.dtype(y_dtype).itemsize + 4) * Coutp * Mp
                + 4 * 2 * Coutp * TM),
        )(scale_t, shift_t, y_conv)

    # Channel-major (Cout, M) -> NCHW: one transpose, no extra full-size slabs.
    y = y_t[:Cout, :M].reshape(Cout, N, Ho, Wo)
    return jnp.transpose(y, (1, 0, 2, 3))


def _reference(x_nchw, w_oihw, bias, gamma, beta, *, stride, padding, eps=1e-5):
    y = jax.lax.conv_general_dilated(
        x_nchw, w_oihw, (stride, stride),
        [(padding, padding), (padding, padding)],
        dimension_numbers=("NCHW", "OIHW", "NCHW"))
    y = y + bias.reshape(1, -1, 1, 1)
    mean = jnp.mean(y, axis=(0, 2, 3), keepdims=True)
    var = jnp.mean((y - mean) ** 2, axis=(0, 2, 3), keepdims=True)
    yn = (y - mean) * jax.lax.rsqrt(var + eps) * gamma.reshape(1, -1, 1, 1) \
        + beta.reshape(1, -1, 1, 1)
    return jnp.maximum(yn, 0.0)


if __name__ == "__main__":
    # Module hyper-params (small, consistent with the ConvReLU ctor).
    dep_in_channels, out_channels = 4, 8
    kernel_size, stride, padding = 3, 1, 1
    N, H, W = 2, 16, 16

    key = jax.random.PRNGKey(0)
    kx, kw = jax.random.split(key)

    # Input (NCHW, as nn.Conv2d expects).
    x = jax.random.normal(kx, (N, dep_in_channels, H, W), dtype=jnp.float32)

    # Conv weight: xavier_normal_ (gain=1): std = sqrt(2 / (fan_in + fan_out)).
    fan_in = dep_in_channels * kernel_size * kernel_size
    fan_out = out_channels * kernel_size * kernel_size
    std = (2.0 / (fan_in + fan_out)) ** 0.5
    w = std * jax.random.normal(
        kw, (out_channels, dep_in_channels, kernel_size, kernel_size),
        dtype=jnp.float32)
    bias = jnp.zeros((out_channels,), jnp.float32)       # xavier_init sets bias=0

    # BatchNorm2d default params (weight=1, bias=0); training-mode batch stats.
    gamma = jnp.ones((out_channels,), jnp.float32)
    beta = jnp.zeros((out_channels,), jnp.float32)

    ref = _reference(x, w, bias, gamma, beta, stride=stride, padding=padding)

    # 1) Fused single-pass VMEM-resident path (default; f32 matmul -> tight check).
    out = conv_bn_relu(x, w, bias, gamma, beta, stride=stride, padding=padding)
    out = jax.block_until_ready(out)
    assert out.shape == ref.shape == (N, out_channels, H, W)
    assert jnp.allclose(out, ref, atol=1e-4, rtol=1e-4), \
        f"fused path max abs err {jnp.max(jnp.abs(out - ref))}"

    # 2) Two-pass streaming fallback (forced), bf16 matmul + bf16 packed intermediate.
    out2 = conv_bn_relu(x, w, bias, gamma, beta, stride=stride, padding=padding,
                        tile_m=128, matmul_dtype=jnp.bfloat16, y_dtype=jnp.bfloat16,
                        max_fused_vmem_bytes=0)
    out2 = jax.block_until_ready(out2)
    assert out2.shape == ref.shape
    assert jnp.allclose(out2, ref, atol=5e-2, rtol=5e-2), \
        f"two-pass path max abs err {jnp.max(jnp.abs(out2 - ref))}"

    print("KERNEL_OK")
</pallas_src>

<mosaic_0001>
module attributes {stable_mosaic.version = 11 : i64} {
  func.func @_fused_conv_bn_relu_kernel(%arg0: i32, %arg1: memref<512x128xf32, #tpu.memory_space<vmem>>, %arg2: memref<128x128xf32, #tpu.memory_space<vmem>>, %arg3: memref<1x128xf32, #tpu.memory_space<vmem>>, %arg4: memref<1x128xf32, #tpu.memory_space<vmem>>, %arg5: memref<8x512xf32, #tpu.memory_space<vmem>>) attributes {dimension_semantics = [#tpu.dimension_semantics<arbitrary>], iteration_bounds = array<i64: 1>, scalar_prefetch = 0 : i64, scratch_operands = 0 : i64, tpu.core_type = #tpu.core_type<tc>, window_params = [{pipeline_mode = #tpu.pipeline_mode<synchronous>, transform_indices = @transform_0, window_bounds = array<i64: 512, 128>}, {pipeline_mode = #tpu.pipeline_mode<synchronous>, transform_indices = @transform_1, window_bounds = array<i64: 128, 128>}, {pipeline_mode = #tpu.pipeline_mode<synchronous>, transform_indices = @transform_2, window_bounds = array<i64: 1, 128>}, {pipeline_mode = #tpu.pipeline_mode<synchronous>, transform_indices = @transform_3, window_bounds = array<i64: 1, 128>}, {pipeline_mode = #tpu.pipeline_mode<synchronous>, transform_indices = @transform_4, window_bounds = array<i64: 8, 512>}]} {
    %c0 = arith.constant 0 : index
    %c0_0 = arith.constant 0 : index
    %0 = vector.load %arg1[%c0, %c0_0] : memref<512x128xf32, #tpu.memory_space<vmem>>, vector<512x128xf32>
    %c0_1 = arith.constant 0 : index
    %c0_2 = arith.constant 0 : index
    %1 = vector.load %arg2[%c0_1, %c0_2] : memref<128x128xf32, #tpu.memory_space<vmem>>, vector<128x128xf32>
    %cst = arith.constant dense<0.000000e+00> : vector<512x128xf32>
    %2 = tpu.matmul %0, %1, %cst {dimension_numbers = #tpu.dot_dimension_numbers<[1], [0], [0], [1], [0, 0, 1, 1], [], []>} : vector<512x128xf32>, vector<128x128xf32>, vector<512x128xf32> -> vector<512x128xf32>
    %cst_3 = arith.constant dense<0.000000e+00> : vector<128xf32>
    %3 = vector.multi_reduction <add>, %2, %cst_3 [0] : vector<512x128xf32> to vector<128xf32>
    %4 = vector.shape_cast %3 : vector<128xf32> to vector<1x128xf32>
    %cst_4 = arith.constant 0.001953125 : f32
    %5 = vector.broadcast %cst_4 : f32 to vector<1x128xf32>
    %6 = arith.mulf %4, %5 : vector<1x128xf32>
    %7 = arith.mulf %2, %2 : vector<512x128xf32>
    %cst_5 = arith.constant dense<0.000000e+00> : vector<128xf32>
    %8 = vector.multi_reduction <add>, %7, %cst_5 [0] : vector<512x128xf32> to vector<128xf32>
    %9 = vector.shape_cast %8 : vector<128xf32> to vector<1x128xf32>
    %cst_6 = arith.constant 0.001953125 : f32
    %10 = vector.broadcast %cst_6 : f32 to vector<1x128xf32>
    %11 = arith.mulf %9, %10 : vector<1x128xf32>
    %12 = arith.mulf %6, %6 : vector<1x128xf32>
    %13 = arith.subf %11, %12 : vector<1x128xf32>
    %cst_7 = arith.constant 0.000000e+00 : f32
    %14 = vector.broadcast %cst_7 : f32 to vector<1x128xf32>
    %15 = arith.maximumf %13, %14 : vector<1x128xf32>
    %c0_8 = arith.constant 0 : index
    %c0_9 = arith.constant 0 : index
    %16 = vector.load %arg3[%c0_8, %c0_9] : memref<1x128xf32, #tpu.memory_space<vmem>>, vector<1x128xf32>
    %cst_10 = arith.constant 9.99999974E-6 : f32
    %17 = vector.broadcast %cst_10 : f32 to vector<1x128xf32>
    %18 = arith.addf %15, %17 : vector<1x128xf32>
    %19 = math.rsqrt %18 : vector<1x128xf32>
    %20 = arith.mulf %16, %19 : vector<1x128xf32>
    %c0_11 = arith.constant 0 : index
    %c0_12 = arith.constant 0 : index
    %21 = vector.load %arg4[%c0_11, %c0_12] : memref<1x128xf32, #tpu.memory_space<vmem>>, vector<1x128xf32>
    %22 = arith.mulf %6, %20 : vector<1x128xf32>
    %23 = arith.subf %21, %22 : vector<1x128xf32>
    %24 = vector.broadcast %20 : vector<1x128xf32> to vector<512x128xf32>
    %25 = arith.mulf %2, %24 : vector<512x128xf32>
    %26 = vector.broadcast %23 : vector<1x128xf32> to vector<512x128xf32>
    %27 = arith.addf %25, %26 : vector<512x128xf32>
    %cst_13 = arith.constant 0.000000e+00 : f32
    %28 = vector.broadcast %cst_13 : f32 to vector<512x128xf32>
    %29 = arith.maximumf %27, %28 : vector<512x128xf32>
    %30 = tpu.transpose %29, [1, 0] : vector<512x128xf32> -> vector<128x512xf32>
    %31 = vector.extract_strided_slice %30 {offsets = [0, 0], sizes = [8, 512], strides = [1, 1]} : vector<128x512xf32> to vector<8x512xf32>
    %c0_14 = arith.constant 0 : index
    %c0_15 = arith.constant 0 : index
    %32 = vector.load %arg5[%c0_14, %c0_15] : memref<8x512xf32, #tpu.memory_space<vmem>>, vector<8x512xf32>
    tpu.vector_store %arg5[%c0_14, %c0_15], %31 {strides = array<i32>} : memref<8x512xf32, #tpu.memory_space<vmem>>, vector<8x512xf32>,
    return
  }
  func.func @transform_0(%arg0: i32) -> (i32, i32) {
    %c0_i32 = arith.constant 0 : i32
    %c0_i32_0 = arith.constant 0 : i32
    %c0_i32_1 = arith.constant 0 : i32
    return %c0_i32, %c0_i32_0 : i32, i32
  }
  func.func @transform_1(%arg0: i32) -> (i32, i32) {
    %c0_i32 = arith.constant 0 : i32
    %c0_i32_0 = arith.constant 0 : i32
    %c0_i32_1 = arith.constant 0 : i32
    return %c0_i32, %c0_i32_0 : i32, i32
  }
  func.func @transform_2(%arg0: i32) -> (i32, i32) {
    %c0_i32 = arith.constant 0 : i32
    %c0_i32_0 = arith.constant 0 : i32
    %c0_i32_1 = arith.constant 0 : i32
    return %c0_i32, %c0_i32_0 : i32, i32
  }
  func.func @transform_3(%arg0: i32) -> (i32, i32) {
    %c0_i32 = arith.constant 0 : i32
    %c0_i32_0 = arith.constant 0 : i32
    %c0_i32_1 = arith.constant 0 : i32
    return %c0_i32, %c0_i32_0 : i32, i32
  }
  func.func @transform_4(%arg0: i32) -> (i32, i32) {
    %c0_i32 = arith.constant 0 : i32
    %c0_i32_0 = arith.constant 0 : i32
    %c0_i32_1 = arith.constant 0 : i32
    return %c0_i32, %c0_i32_0 : i32, i32
  }
}

</mosaic_0001>

<bundles_post_ra>
// kernel: tpu_custom_call.1
= control target key start
LH: loop header
LB: loop body
LE: loop exit
PB: predicated region body
PF: predicated region fallthrough
CT: control target
= control target key end

     0   :  { %9 = vsyncpa [#allocation3], 0  ;;  %s2074_s0 = inlined_call_operand.hbm [shape: f32[512,128], index: 0, kind: input, shape index: {}]   ;;  %s2075_s1 = inlined_call_operand.hbm [shape: f32[128,128], index: 1, kind: input, shape index: {}]   ;;  %s2076_s2 = inlined_call_operand.vmem [shape: f32[1,128], index: 2, kind: input, shape index: {}]   ;;  %s2077_s3 = inlined_call_operand.vmem [shape: f32[1,128], index: 3, kind: input, shape index: {}]   ;;  %s2078_s4 = inlined_call_operand.hbm [shape: f32[8,512], index: 4, kind: output, shape index: {}]  }
   0x1   :  { %10 = vsyncpa [#allocation6], 0 }
   0x2   :  { %11 = vsyncpa [#allocation4], 0  ;;  %s1390_s15 = smov [#allocation2]  }
   0x3   :  { %s17_s16 = sshll.u32 %s1390_s15, 4  ;;  %s18_s16 = int_to_ptr.vmem [resolvable:$true] %s17_s16 }
   0x4   :  { %s1332_s17 = scalar_lea.vmem %s18_s16, 8192  ;;  %p1337_p1 = scmp.lt.s32.totalorder %s18_s16, %s18_s16 }
   0x5   :  { %p1333_p0 = scmp.ne.s32.totalorder %s18_s16, %s1332_s17  ;;  %p1338_p2 = scmp.lt.s32.totalorder %s1332_s17, %s1332_s17 }
   0x7   :  { %p1339_p3 = por %p1338_p2, %p1337_p1 }
   0x9   :  { %p1340_p4 = pnand %p1339_p3, %p1333_p0 }
   0xb   :  { %1343 = shalt.err (!%p1340_p4)
}
   0xc   :  { %s1391_s18 = smov 128   ;;  %s1392_s19 = smov 8  }
   0xd   :  { %23 = dma.hbm_to_vmem [thread:$0]  %s2074_s0, 8192, %s18_s16, [#allocation3], %s1391_s18, %s1391_s18, %s1392_s19  }
   0xe   :  { %s1393_s22 = smov [#allocation5]  }
   0xf   :  { %s29_s23 = sshll.u32 %s1393_s22, 4  ;;  %s30_s23 = int_to_ptr.vmem [resolvable:$true] %s29_s23 }
  0x10   :  { %s1352_s24 = scalar_lea.vmem %s30_s23, 2048  ;;  %p1357_p6 = scmp.lt.s32.totalorder %s30_s23, %s30_s23 }
  0x11   :  { %p1353_p5 = scmp.ne.s32.totalorder %s30_s23, %s1352_s24  ;;  %p1358_p7 = scmp.lt.s32.totalorder %s1352_s24, %s1352_s24 }
  0x13   :  { %p1359_p8 = por %p1358_p7, %p1357_p6 }
  0x15   :  { %p1360_p9 = pnand %p1359_p8, %p1353_p5 }
  0x17   :  { %1363 = shalt.err (!%p1360_p9)
}
  0x18   :  { %35 = dma.hbm_to_vmem [thread:$0]  %s2075_s1, 2048, %s30_s23, [#allocation6], %s1391_s18, %s1391_s18, %s1392_s19  }
  0x19   :  { %1384 = dma.done.wait [#allocation3], 8192  }
  0x1a   :  { %1385 = vsyncadd [#allocation3], 4294959104 }
  0x1b   :  { %1386 = dma.done.wait [#allocation6], 2048  }
  0x1c   :  { %1387 = vsyncadd [#allocation6], 4294965248  ;;  %v125_v0 = vld [vmem:[#allocation5 + $0x78] sm:$0xff]  ;;  %v124_v1 = vld [vmem:[#allocation5 + $0x70] sm:$0xff] }
  0x1d   :  { %1157 = vmatprep.subr.mxu0 %v125_v0  ;;  %1285 = vmatprep.subr.mxu1 %v125_v0  ;;  %v123_v2 = vld [vmem:[#allocation5 + $0x68] sm:$0xff]  ;;  %v122_v3 = vld [vmem:[#allocation5 + $0x60] sm:$0xff]  ;;  %v121_v5 = vld [vmem:[#allocation5 + $0x58] sm:$0xff] }
  0x1e   :  { %1158 = vmatpush3.msra.mxu0 %v125_v0  ;;  %1301 = vmatpush3.msra.mxu1 %v125_v0  ;;  %v46_v4 = vld [vmem:[#allocation2] sm:$0xff]  ;;  %v120_v6 = vld [vmem:[#allocation5 + $0x50] sm:$0xff]  ;;  %v119_v7 = vld [vmem:[#allocation5 + $0x48] sm:$0xff] }
  0x1f   :  { %1159 = vmatprep.subr.mxu0 %v124_v1  ;;  %1286 = vmatprep.subr.mxu1 %v124_v1  ;;  %v118_v8 = vld [vmem:[#allocation5 + $0x40] sm:$0xff]  ;;  %v117_v9 = vld [vmem:[#allocation5 + $0x38] sm:$0xff]  ;;  %v116_v10 = vld [vmem:[#allocation5 + $0x30] sm:$0xff] }
  0x20   :  { %1160 = vmatpush3.msra.mxu0 %v124_v1  ;;  %1302 = vmatpush3.msra.mxu1 %v124_v1  ;;  %v115_v11 = vld [vmem:[#allocation5 + $0x28] sm:$0xff]  ;;  %v114_v12 = vld [vmem:[#allocation5 + $0x20] sm:$0xff]  ;;  %v113_v13 = vld [vmem:[#allocation5 + $0x18] sm:$0xff] }
  0x21   :  { %1161 = vmatprep.subr.mxu0 %v123_v2  ;;  %1287 = vmatprep.subr.mxu1 %v123_v2  ;;  %v112_v14 = vld [vmem:[#allocation5 + $0x10] sm:$0xff]  ;;  %v111_v15 = vld [vmem:[#allocation5 + $0x8] sm:$0xff]  ;;  %v110_v16 = vld [vmem:[#allocation5] sm:$0xff] }
  0x22   :  { %1162 = vmatpush3.msra.mxu0 %v123_v2  ;;  %1189 = vmatprep.mubr.f32.mxu0 %v46_v4  ;;  %v47_v17 = vld [vmem:[#allocation2 + $0x8] sm:$0xff]  ;;  %v48_v18 = vld [vmem:[#allocation2 + $0x10] sm:$0xff]  ;;  %v78_v19 = vld [vmem:[#allocation2 + $0x100] sm:$0xff] }
  0x23   :  { %1163 = vmatprep.subr.mxu0 %v122_v3  ;;  %1303 = vmatpush3.msra.mxu1 %v123_v2  ;;  %v79_v20 = vld [vmem:[#allocation2 + $0x108] sm:$0xff]  ;;  %v80_v21 = vld [vmem:[#allocation2 + $0x110] sm:$0xff]  ;;  %v49_v22 = vld [vmem:[#allocation2 + $0x18] sm:$0xff] }
  0x24   :  { %1164 = vmatpush3.msra.mxu0 %v122_v3  ;;  %1288 = vmatprep.subr.mxu1 %v122_v3  ;;  %v50_v23 = vld [vmem:[#allocation2 + $0x20] sm:$0xff]  ;;  %v81_v24 = vld [vmem:[#allocation2 + $0x118] sm:$0xff]  ;;  %v51_v26 = vld [vmem:[#allocation2 + $0x28] sm:$0xff] }
  0x25   :  { %1165 = vmatprep.subr.mxu0 %v121_v5  ;;  %1304 = vmatpush3.msra.mxu1 %v122_v3  ;;  %v82_v25 = vld [vmem:[#allocation2 + $0x120] sm:$0xff]  ;;  %v52_v27 = vld [vmem:[#allocation2 + $0x30] sm:$0xff]  ;;  %v83_v28 = vld [vmem:[#allocation2 + $0x128] sm:$0xff] }
  0x26   :  { %1166 = vmatpush3.msra.mxu0 %v121_v5  ;;  %1289 = vmatprep.subr.mxu1 %v121_v5  ;;  %v84_v29 = vld [vmem:[#allocation2 + $0x130] sm:$0xff]  ;;  %v53_v30 = vld [vmem:[#allocation2 + $0x38] sm:$0xff]  ;;  %v54_v31 = vld [vmem:[#allocation2 + $0x40] sm:$0xff] }
  0x27   :  { %1167 = vmatprep.subr.mxu0 %v120_v6  ;;  %1305 = vmatpush3.msra.mxu1 %v121_v5  ;;  %v85_v32 = vld [vmem:[#allocation2 + $0x138] sm:$0xff]  ;;  %v86_v33 = vld [vmem:[#allocation2 + $0x140] sm:$0xff]  ;;  %v55_v34 = vld [vmem:[#allocation2 + $0x48] sm:$0xff] }
  0x28   :  { %1168 = vmatpush3.msra.mxu0 %v120_v6  ;;  %1290 = vmatprep.subr.mxu1 %v120_v6  ;;  %v56_v35 = vld [vmem:[#allocation2 + $0x50] sm:$0xff]  ;;  %v87_v36 = vld [vmem:[#allocation2 + $0x148] sm:$0xff]  ;;  %v57_v38 = vld [vmem:[#allocation2 + $0x58] sm:$0xff] }
  0x29   :  { %1169 = vmatprep.subr.mxu0 %v119_v7  ;;  %1306 = vmatpush3.msra.mxu1 %v120_v6  ;;  %v88_v37 = vld [vmem:[#allocation2 + $0x150] sm:$0xff]  ;;  %v58_v39 = vld [vmem:[#allocation2 + $0x60] sm:$0xff]  ;;  %v89_v40 = vld [vmem:[#allocation2 + $0x158] sm:$0xff] }
  0x2a   :  { %1170 = vmatpush3.msra.mxu0 %v119_v7  ;;  %1291 = vmatprep.subr.mxu1 %v119_v7  ;;  %v90_v41 = vld [vmem:[#allocation2 + $0x160] sm:$0xff]  ;;  %v59_v42 = vld [vmem:[#allocation2 + $0x68] sm:$0xff]  ;;  %v60_v43 = vld [vmem:[#allocation2 + $0x70] sm:$0xff] }
  0x2b   :  { %1171 = vmatprep.subr.mxu0 %v118_v8  ;;  %1307 = vmatpush3.msra.mxu1 %v119_v7  ;;  %v91_v44 = vld [vmem:[#allocation2 + $0x168] sm:$0xff]  ;;  %v92_v45 = vld [vmem:[#allocation2 + $0x170] sm:$0xff]  ;;  %v61_v46 = vld [vmem:[#allocation2 + $0x78] sm:$0xff] }
  0x2c   :  { %1172 = vmatpush3.msra.mxu0 %v118_v8  ;;  %1292 = vmatprep.subr.mxu1 %v118_v8  ;;  %v62_v47 = vld [vmem:[#allocation2 + $0x80] sm:$0xff]  ;;  %v93_v48 = vld [vmem:[#allocation2 + $0x178] sm:$0xff]  ;;  %v63_v50 = vld [vmem:[#allocation2 + $0x88] sm:$0xff] }
  0x2d   :  { %1173 = vmatprep.subr.mxu0 %v117_v9  ;;  %1308 = vmatpush3.msra.mxu1 %v118_v8  ;;  %v94_v49 = vld [vmem:[#allocation2 + $0x180] sm:$0xff]  ;;  %v64_v51 = vld [vmem:[#allocation2 + $0x90] sm:$0xff]  ;;  %v95_v52 = vld [vmem:[#allocation2 + $0x188] sm:$0xff] }
  0x2e   :  { %1174 = vmatpush3.msra.mxu0 %v117_v9  ;;  %1293 = vmatprep.subr.mxu1 %v117_v9  ;;  %v96_v53 = vld [vmem:[#allocation2 + $0x190] sm:$0xff]  ;;  %v65_v54 = vld [vmem:[#allocation2 + $0x98] sm:$0xff]  ;;  %v66_v55 = vld [vmem:[#allocation2 + $0xa0] sm:$0xff] }
  0x2f   :  { %1175 = vmatprep.subr.mxu0 %v116_v10  ;;  %1309 = vmatpush3.msra.mxu1 %v117_v9  ;;  %v97_v56 = vld [vmem:[#allocation2 + $0x198] sm:$0xff]  ;;  %v98_v57 = vld [vmem:[#allocation2 + $0x1a0] sm:$0xff]  ;;  %v67_v58 = vld [vmem:[#allocation2 + $0xa8] sm:$0xff] }
  0x30   :  { %1176 = vmatpush3.msra.mxu0 %v116_v10  ;;  %1294 = vmatprep.subr.mxu1 %v116_v10  ;;  %v68_v59 = vld [vmem:[#allocation2 + $0xb0] sm:$0xff]  ;;  %v99_v60 = vld [vmem:[#allocation2 + $0x1a8] sm:$0xff]  ;;  %v69_v62 = vld [vmem:[#allocation2 + $0xb8] sm:$0xff] }
  0x31   :  { %1177 = vmatprep.subr.mxu0 %v115_v11  ;;  %1310 = vmatpush3.msra.mxu1 %v116_v10  ;;  %v100_v61 = vld [vmem:[#allocation2 + $0x1b0] sm:$0xff]  ;;  %v70_v63 = vld [vmem:[#allocation2 + $0xc0] sm:$0xff]  ;;  %v101_v0 = vld [vmem:[#allocation2 + $0x1b8] sm:$0xff] }
  0x32   :  { %1178 = vmatpush3.msra.mxu0 %v115_v11  ;;  %1295 = vmatprep.subr.mxu1 %v115_v11  ;;  %v102_v1 = vld [vmem:[#allocation2 + $0x1c0] sm:$0xff]  ;;  %v71_v2 = vld [vmem:[#allocation2 + $0xc8] sm:$0xff]  ;;  %v72_v3 = vld [vmem:[#allocation2 + $0xd0] sm:$0xff] }
  0x33   :  { %1179 = vmatprep.subr.mxu0 %v114_v12  ;;  %1311 = vmatpush3.msra.mxu1 %v115_v11  ;;  %v103_v4 = vld [vmem:[#allocation2 + $0x1c8] sm:$0xff]  ;;  %v104_v5 = vld [vmem:[#allocation2 + $0x1d0] sm:$0xff]  ;;  %v73_v6 = vld [vmem:[#allocation2 + $0xd8] sm:$0xff] }
  0x34   :  { %1180 = vmatpush3.msra.mxu0 %v114_v12  ;;  %1296 = vmatprep.subr.mxu1 %v114_v12  ;;  %v74_v7 = vld [vmem:[#allocation2 + $0xe0] sm:$0xff]  ;;  %v105_v8 = vld [vmem:[#allocation2 + $0x1d8] sm:$0xff]  ;;  %v75_v10 = vld [vmem:[#allocation2 + $0xe8] sm:$0xff] }
  0x35   :  { %1181 = vmatprep.subr.mxu0 %v113_v13  ;;  %1312 = vmatpush3.msra.mxu1 %v114_v12  ;;  %v106_v9 = vld [vmem:[#allocation2 + $0x1e0] sm:$0xff]  ;;  %v76_v11 = vld [vmem:[#allocation2 + $0xf0] sm:$0xff]  ;;  %v107_v12 = vld [vmem:[#allocation2 + $0x1e8] sm:$0xff] }
  0x36   :  { %1182 = vmatpush3.msra.mxu0 %v113_v13  ;;  %1297 = vmatprep.subr.mxu1 %v113_v13 }
  0x37   :  { %1183 = vmatprep.subr.mxu0 %v112_v14  ;;  %1313 = vmatpush3.msra.mxu1 %v113_v13  ;;  %v108_v13 = vld [vmem:[#allocation2 + $0x1f0] sm:$0xff] }
  0x38   :  { %1184 = vmatpush3.msra.mxu0 %v112_v14  ;;  %1298 = vmatprep.subr.mxu1 %v112_v14 }
  0x39   :  { %1185 = vmatprep.subr.mxu0 %v111_v15  ;;  %1314 = vmatpush3.msra.mxu1 %v112_v14  ;;  %v77_v14 = vld [vmem:[#allocation2 + $0xf8] sm:$0xff] }
  0x3a   :  { %1186 = vmatpush3.msra.mxu0 %v111_v15  ;;  %1299 = vmatprep.subr.mxu1 %v111_v15 }
  0x3b   :  { %1187 = vmatprep.subr.mxu0 %v110_v16  ;;  %1315 = vmatpush3.msra.mxu1 %v111_v15  ;;  %v109_v15 = vld [vmem:[#allocation2 + $0x1f8] sm:$0xff] }
  0x3c   :  { %1188 = vmatpush3.msra.mxu0 %v110_v16  ;;  %1300 = vmatprep.subr.mxu1 %v110_v16 }
  0x3d   :  { %1190 = vmatmul.mubr.f32.vlgmr.msra.gmra.mxu0 %v47_v17  ;;  %1316 = vmatpush3.msra.mxu1 %v110_v16 }
  0x3e   :  { %1192 = vmatprep.mubr.f32.mxu0 %v48_v18  ;;  %1237 = vmatprep.mubr.f32.mxu1 %v78_v19 }
  0x3f   :  { %1238 = vmatmul.mubr.f32.vlgmr.msra.gmra.mxu1 %v79_v20 }
  0x40   :  { %1240 = vmatprep.mubr.f32.mxu1 %v80_v21 }
  0x41   :  { %1193 = vmatmul.mubr.f32.gmra.mxu0 %v49_v22 }
  0x42   :  { %1195 = vmatprep.mubr.f32.mxu0 %v50_v23 }
  0x43   :  { %1241 = vmatmul.mubr.f32.gmra.mxu1 %v81_v24 }
  0x44   :  { %1243 = vmatprep.mubr.f32.mxu1 %v82_v25 }
  0x45   :  { %1196 = vmatmul.mubr.f32.gmra.mxu0 %v51_v26 }
  0x46   :  { %1198 = vmatprep.mubr.f32.mxu0 %v52_v27 }
  0x47   :  { %1244 = vmatmul.mubr.f32.gmra.mxu1 %v83_v28 }
  0x48   :  { %1246 = vmatprep.mubr.f32.mxu1 %v84_v29 }
  0x49   :  { %1199 = vmatmul.mubr.f32.gmra.mxu0 %v53_v30 }
  0x4a   :  { %1201 = vmatprep.mubr.f32.mxu0 %v54_v31 }
  0x4b   :  { %1247 = vmatmul.mubr.f32.gmra.mxu1 %v85_v32 }
  0x4c   :  { %1249 = vmatprep.mubr.f32.mxu1 %v86_v33 }
  0x4d   :  { %1202 = vmatmul.mubr.f32.gmra.mxu0 %v55_v34 }
  0x4e   :  { %1204 = vmatprep.mubr.f32.mxu0 %v56_v35 }
  0x4f   :  { %1250 = vmatmul.mubr.f32.gmra.mxu1 %v87_v36 }
  0x50   :  { %1252 = vmatprep.mubr.f32.mxu1 %v88_v37 }
  0x51   :  { %1205 = vmatmul.mubr.f32.gmra.mxu0 %v57_v38 }
  0x52   :  { %1207 = vmatprep.mubr.f32.mxu0 %v58_v39 }
  0x53   :  { %1253 = vmatmul.mubr.f32.gmra.mxu1 %v89_v40 }
  0x54   :  { %1255 = vmatprep.mubr.f32.mxu1 %v90_v41 }
  0x55   :  { %1208 = vmatmul.mubr.f32.gmra.mxu0 %v59_v42 }
  0x56   :  { %1210 = vmatprep.mubr.f32.mxu0 %v60_v43 }
  0x57   :  { %1256 = vmatmul.mubr.f32.gmra.mxu1 %v91_v44 }
  0x58   :  { %1258 = vmatprep.mubr.f32.mxu1 %v92_v45 }
  0x59   :  { %1211 = vmatmul.mubr.f32.gmra.mxu0 %v61_v46 }
  0x5a   :  { %1213 = vmatprep.mubr.f32.mxu0 %v62_v47 }
  0x5b   :  { %1259 = vmatmul.mubr.f32.gmra.mxu1 %v93_v48 }
  0x5c   :  { %1261 = vmatprep.mubr.f32.mxu1 %v94_v49 }
  0x5d   :  { %1214 = vmatmul.mubr.f32.gmra.mxu0 %v63_v50 }
  0x5e   :  { %1216 = vmatprep.mubr.f32.mxu0 %v64_v51 }
  0x5f   :  { %1262 = vmatmul.mubr.f32.gmra.mxu1 %v95_v52 }
  0x60   :  { %1264 = vmatprep.mubr.f32.mxu1 %v96_v53 }
  0x61   :  { %1217 = vmatmul.mubr.f32.gmra.mxu0 %v65_v54 }
  0x62   :  { %1219 = vmatprep.mubr.f32.mxu0 %v66_v55 }
  0x63   :  { %1265 = vmatmul.mubr.f32.gmra.mxu1 %v97_v56 }
  0x64   :  { %1267 = vmatprep.mubr.f32.mxu1 %v98_v57 }
  0x65   :  { %1220 = vmatmul.mubr.f32.gmra.mxu0 %v67_v58 }
  0x66   :  { %1222 = vmatprep.mubr.f32.mxu0 %v68_v59 }
  0x67   :  { %1268 = vmatmul.mubr.f32.gmra.mxu1 %v99_v60 }
  0x68   :  { %1270 = vmatprep.mubr.f32.mxu1 %v100_v61 }
  0x69   :  { %1223 = vmatmul.mubr.f32.gmra.mxu0 %v69_v62 }
  0x6a   :  { %1225 = vmatprep.mubr.f32.mxu0 %v70_v63 }
  0x6b   :  { %1271 = vmatmul.mubr.f32.gmra.mxu1 %v101_v0 }
  0x6c   :  { %1273 = vmatprep.mubr.f32.mxu1 %v102_v1 }
  0x6d   :  { %1226 = vmatmul.mubr.f32.gmra.mxu0 %v71_v2 }
  0x6e   :  { %1228 = vmatprep.mubr.f32.mxu0 %v72_v3 }
  0x6f   :  { %1274 = vmatmul.mubr.f32.gmra.mxu1 %v103_v4 }
  0x70   :  { %1276 = vmatprep.mubr.f32.mxu1 %v104_v5 }
  0x71   :  { %1229 = vmatmul.mubr.f32.gmra.mxu0 %v73_v6 }
  0x72   :  { %1231 = vmatprep.mubr.f32.mxu0 %v74_v7 }
  0x73   :  { %1277 = vmatmul.mubr.f32.gmra.mxu1 %v105_v8 }
  0x74   :  { %1279 = vmatprep.mubr.f32.mxu1 %v106_v9 }
  0x75   :  { %1232 = vmatmul.mubr.f32.gmra.mxu0 %v75_v10 }
  0x76   :  { %1234 = vmatprep.mubr.f32.mxu0 %v76_v11 }
  0x77   :  { %1280 = vmatmul.mubr.f32.gmra.mxu1 %v107_v12 }
  0x78   :  { %1282 = vmatprep.mubr.f32.mxu1 %v108_v13 }
  0x79   :  { %1235 = vmatmul.mubr.f32.gmra.mxu0 %v77_v14 }
  0x7b   :  { %1283 = vmatmul.mubr.f32.gmra.mxu1 %v109_v15 }
  0xfd   :  { %v1426_v16 = vpop.f32.mrf.mxu0 }
  0xfe   :  { %v582_v22 = vmul.f32 %v1426_v16, %v1426_v16 }
  0xff   :  { %v1428_v17 = vpop.f32.mrf.mxu0  ;;  %v1430_v18 = vpop.f32.mrf.mxu1 }
 0x100   :  { %v581_v19 = vmul.f32 %v1428_v17, %v1428_v17  ;;  %v511_v23 = vadd.f32 %v1426_v16, %v1428_v17 }
 0x101   :  { %v1434_v20 = vpop.f32.mrf.mxu0  ;;  %v1436_v21 = vpop.f32.mrf.mxu1 }
 0x102   :  { %v645_v25 = vadd.f32 %v582_v22, %v581_v19  ;;  %v584_v30 = vmul.f32 %v1434_v20, %v1434_v20 }
 0x103   :  { %v1442_v24 = vpop.f32.mrf.mxu0  ;;  %v1449_v29 = vpop.f32.mrf.mxu1 }
 0x104   :  { %v512_v26 = vadd.f32 %v511_v23, %v1442_v24  ;;  %v583_v27 = vmul.f32 %v1442_v24, %v1442_v24 }
 0x105   :  { %v1447_v28 = vpop.f32.mrf.mxu0  ;;  %v1461_v38 = vpop.f32.mrf.mxu1 }
 0x106   :  { %v646_v31 = vadd.f32 %v645_v25, %v583_v27  ;;  %v513_v32 = vadd.f32 %v1434_v20, %v512_v26  ;;  %v586_v39 = vmul.f32 %v1447_v28, %v1447_v28 }
 0x107   :  { %v1454_v33 = vpop.f32.mrf.mxu0  ;;  %v1473_v47 = vpop.f32.mrf.mxu1 }
 0x108   :  { %v514_v34 = vadd.f32 %v513_v32, %v1454_v33  ;;  %v585_v35 = vmul.f32 %v1454_v33, %v1454_v33  ;;  %v647_v36 = vadd.f32 %v646_v31, %v584_v30 }
 0x109   :  { %v1459_v37 = vpop.f32.mrf.mxu0  ;;  %v1485_v56 = vpop.f32.mrf.mxu1 }
 0x10a   :  { %v648_v40 = vadd.f32 %v647_v36, %v585_v35  ;;  %v515_v41 = vadd.f32 %v1447_v28, %v514_v34  ;;  %v588_v48 = vmul.f32 %v1459_v37, %v1459_v37 }
 0x10b   :  { %v1466_v42 = vpop.f32.mrf.mxu0  ;;  %v1497_v1 = vpop.f32.mrf.mxu1 }
 0x10c   :  { %v516_v43 = vadd.f32 %v515_v41, %v1466_v42  ;;  %v587_v44 = vmul.f32 %v1466_v42, %v1466_v42  ;;  %v649_v45 = vadd.f32 %v648_v40, %v586_v39 }
 0x10d   :  { %v1471_v46 = vpop.f32.mrf.mxu0  ;;  %v1509_v10 = vpop.f32.mrf.mxu1 }
 0x10e   :  { %2103 = vst [vmem:[#allocation11_spill] sm:$0xff] %v1471_v46  ;;  %v650_v49 = vadd.f32 %v649_v45, %v587_v44  ;;  %v517_v50 = vadd.f32 %v1459_v37, %v516_v43  ;;  %v590_v57 = vmul.f32 %v1471_v46, %v1471_v46 }
 0x10f   :  { %v1478_v51 = vpop.f32.mrf.mxu0  ;;  %v1521_v25 = vpop.f32.mrf.mxu1 }
 0x110   :  { %v518_v52 = vadd.f32 %v517_v50, %v1478_v51  ;;  %v589_v53 = vmul.f32 %v1478_v51, %v1478_v51  ;;  %v651_v54 = vadd.f32 %v650_v49, %v588_v48 }
 0x111   :  { %v1483_v55 = vpop.f32.mrf.mxu0  ;;  %v1533_v39 = vpop.f32.mrf.mxu1 }
 0x112   :  { %2104 = vst [vmem:[#allocation12_spill] sm:$0xff] %v1483_v55  ;;  %v652_v58 = vadd.f32 %v651_v54, %v589_v53  ;;  %v519_v59 = vadd.f32 %v1471_v46, %v518_v52  ;;  %v592_v2 = vmul.f32 %v1483_v55, %v1483_v55 }
 0x113   :  { %v1490_v60 = vpop.f32.mrf.mxu0  ;;  %v1545_v52 = vpop.f32.mrf.mxu1 }
 0x114   :  { %2105 = vst [vmem:[#allocation13_spill] sm:$0xff] %v1490_v60  ;;  %v520_v61 = vadd.f32 %v519_v59, %v1490_v60  ;;  %v591_v62 = vmul.f32 %v1490_v60, %v1490_v60  ;;  %v653_v63 = vadd.f32 %v652_v58, %v590_v57 }
 0x115   :  { %v1495_v0 = vpop.f32.mrf.mxu0 }
 0x116   :  { %2106 = vst [vmem:[#allocation14_spill] sm:$0xff] %v1495_v0  ;;  %v654_v3 = vadd.f32 %v653_v63, %v591_v62  ;;  %v521_v4 = vadd.f32 %v1483_v55, %v520_v61  ;;  %v594_v11 = vmul.f32 %v1495_v0, %v1495_v0 }
 0x117   :  { %v1502_v5 = vpop.f32.mrf.mxu0 }
 0x118   :  { %2107 = vst [vmem:[#allocation15_spill] sm:$0xff] %v1502_v5  ;;  %v522_v6 = vadd.f32 %v521_v4, %v1502_v5  ;;  %v593_v7 = vmul.f32 %v1502_v5, %v1502_v5  ;;  %v655_v8 = vadd.f32 %v654_v3, %v592_v2  ;;  %v1557_v2 = vpop.f32.mrf.mxu1 }
 0x119   :  { %v1507_v9 = vpop.f32.mrf.mxu0 }
 0x11a   :  { %2108 = vst [vmem:[#allocation16_spill] sm:$0xff] %v1507_v9  ;;  %v656_v12 = vadd.f32 %v655_v8, %v593_v7  ;;  %v523_v13 = vadd.f32 %v1495_v0, %v522_v6  ;;  %v596_v26 = vmul.f32 %v1507_v9, %v1507_v9 }
 0x11b   :  { %v1514_v14 = vpop.f32.mrf.mxu0 }
 0x11c   :  { %2109 = vst [vmem:[#allocation17_spill] sm:$0xff] %v1514_v14  ;;  %v524_v15 = vadd.f32 %v523_v13, %v1514_v14  ;;  %v595_v19 = vmul.f32 %v1514_v14, %v1514_v14  ;;  %v657_v22 = vadd.f32 %v656_v12, %v594_v11 }
 0x11d   :  { %v1519_v23 = vpop.f32.mrf.mxu0 }
 0x11e   :  { %v658_v27 = vadd.f32 %v657_v22, %v595_v19  ;;  %v525_v30 = vadd.f32 %v1507_v9, %v524_v15  ;;  %v598_v40 = vmul.f32 %v1519_v23, %v1519_v23  ;;  %v1569_v15 = vpop.f32.mrf.mxu1 }
 0x11f   :  { %v1526_v31 = vpop.f32.mrf.mxu0 }
 0x120   :  { %v526_v32 = vadd.f32 %v525_v30, %v1526_v31  ;;  %v597_v34 = vmul.f32 %v1526_v31, %v1526_v31  ;;  %v659_v35 = vadd.f32 %v658_v27, %v596_v26 }
 0x121   :  { %v1531_v36 = vpop.f32.mrf.mxu0 }
 0x122   :  { %v660_v41 = vadd.f32 %v659_v35, %v597_v34  ;;  %v527_v43 = vadd.f32 %v1519_v23, %v526_v32  ;;  %v600_v53 = vmul.f32 %v1531_v36, %v1531_v36 }
 0x123   :  { %v1538_v44 = vpop.f32.mrf.mxu0 }
 0x124   :  { %v528_v45 = vadd.f32 %v527_v43, %v1538_v44  ;;  %v599_v48 = vmul.f32 %v1538_v44, %v1538_v44  ;;  %v661_v49 = vadd.f32 %v660_v41, %v598_v40  ;;  %v1581_v40 = vpop.f32.mrf.mxu1 }
 0x125   :  { %v1543_v50 = vpop.f32.mrf.mxu0 }
 0x126   :  { %v662_v54 = vadd.f32 %v661_v49, %v599_v48  ;;  %v529_v57 = vadd.f32 %v1531_v36, %v528_v45  ;;  %v602_v3 = vmul.f32 %v1543_v50, %v1543_v50 }
 0x127   :  { %v1550_v58 = vpop.f32.mrf.mxu0 }
 0x128   :  { %v530_v59 = vadd.f32 %v529_v57, %v1550_v58  ;;  %v601_v61 = vmul.f32 %v1550_v58, %v1550_v58  ;;  %v663_v62 = vadd.f32 %v662_v54, %v600_v53 }
 0x129   :  { %v1555_v63 = vpop.f32.mrf.mxu0 }
 0x12a   :  { %v664_v4 = vadd.f32 %v663_v62, %v601_v61  ;;  %v531_v6 = vadd.f32 %v1543_v50, %v530_v59  ;;  %v604_v19 = vmul.f32 %v1555_v63, %v1555_v63  ;;  %v1593_v59 = vpop.f32.mrf.mxu1 }
 0x12b   :  { %v1562_v7 = vpop.f32.mrf.mxu0  ;;  %2115 = vst [vmem:[#allocation23_spill] sm:$0xff] %v1593_v59 }
 0x12c   :  { %v532_v8 = vadd.f32 %v531_v6, %v1562_v7  ;;  %v603_v11 = vmul.f32 %v1562_v7, %v1562_v7  ;;  %v665_v12 = vadd.f32 %v664_v4, %v602_v3 }
 0x12d   :  { %v1567_v13 = vpop.f32.mrf.mxu0 }
 0x12e   :  { %2110 = vst [vmem:[#allocation18_spill] sm:$0xff] %v1567_v13  ;;  %v666_v22 = vadd.f32 %v665_v12, %v603_v11  ;;  %v533_v26 = vadd.f32 %v1555_v63, %v532_v8  ;;  %v606_v41 = vmul.f32 %v1567_v13, %v1567_v13 }
 0x12f   :  { %v1574_v27 = vpop.f32.mrf.mxu0 }
 0x130   :  { %2111 = vst [vmem:[#allocation19_spill] sm:$0xff] %v1574_v27  ;;  %v534_v30 = vadd.f32 %v533_v26, %v1574_v27  ;;  %v605_v32 = vmul.f32 %v1574_v27, %v1574_v27  ;;  %v667_v34 = vadd.f32 %v666_v22, %v604_v19  ;;  %v1605_v19 = vpop.f32.mrf.mxu1 }
 0x131   :  { %v1579_v35 = vpop.f32.mrf.mxu0 }
 0x132   :  { %2112 = vst [vmem:[#allocation20_spill] sm:$0xff] %v1579_v35  ;;  %v668_v43 = vadd.f32 %v667_v34, %v605_v32  ;;  %v535_v45 = vadd.f32 %v1567_v13, %v534_v30  ;;  %v608_v61 = vmul.f32 %v1579_v35, %v1579_v35 }
 0x133   :  { %v1586_v48 = vpop.f32.mrf.mxu0 }
 0x134   :  { %2113 = vst [vmem:[#allocation21_spill] sm:$0xff] %v1586_v48  ;;  %v536_v49 = vadd.f32 %v535_v45, %v1586_v48  ;;  %v607_v53 = vmul.f32 %v1586_v48, %v1586_v48  ;;  %v669_v54 = vadd.f32 %v668_v43, %v606_v41  ;;  %v1615_v45 = vpop.f32.mrf.mxu1 }
 0x135   :  { %v1591_v57 = vpop.f32.mrf.mxu0 }
 0x136   :  { %2114 = vst [vmem:[#allocation22_spill] sm:$0xff] %v1591_v57  ;;  %v670_v62 = vadd.f32 %v669_v54, %v607_v53  ;;  %v537_v3 = vadd.f32 %v1579_v35, %v536_v49  ;;  %v610_v22 = vmul.f32 %v1591_v57, %v1591_v57 }
 0x137   :  { %v1598_v4 = vpop.f32.mrf.mxu0 }
 0x138   :  { %2116 = vst [vmem:[#allocation24_spill] sm:$0xff] %v1598_v4  ;;  %v538_v6 = vadd.f32 %v537_v3, %v1598_v4  ;;  %v609_v8 = vmul.f32 %v1598_v4, %v1598_v4  ;;  %v671_v11 = vadd.f32 %v670_v62, %v608_v61  ;;  %v613_v3 = vmul.f32 %v1436_v21, %v1436_v21 }
 0x139   :  { %v1603_v12 = vpop.f32.mrf.mxu0 }
 0x13a   :  { %2117 = vst [vmem:[#allocation25_spill] sm:$0xff] %v1603_v12  ;;  %v672_v26 = vadd.f32 %v671_v11, %v609_v8  ;;  %v539_v30 = vadd.f32 %v1591_v57, %v538_v6  ;;  %v612_v49 = vmul.f32 %v1603_v12, %v1603_v12  ;;  %v1623_v6 = vpop.f32.mrf.mxu1  ;;  %v614_v8 = vmul.f32 %v1430_v18, %v1430_v18 }
 0x13b   :  { %v1610_v32 = vpop.f32.mrf.mxu0 }
 0x13c   :  { %2118 = vst [vmem:[#allocation26_spill] sm:$0xff] %v1610_v32  ;;  %v540_v34 = vadd.f32 %v539_v30, %v1610_v32  ;;  %v611_v41 = vmul.f32 %v1610_v32, %v1610_v32  ;;  %v673_v43 = vadd.f32 %v672_v26, %v610_v22  ;;  %v615_v30 = vmul.f32 %v1461_v38, %v1461_v38 }
 0x13e   :  { %v541_v53 = vadd.f32 %v1603_v12, %v540_v34  ;;  %v674_v54 = vadd.f32 %v673_v43, %v611_v41  ;;  %v1631_v41 = vpop.f32.mrf.mxu1  ;;  %v616_v43 = vmul.f32 %v1449_v29, %v1449_v29 }
 0x140   :  { %v675_v61 = vadd.f32 %v674_v54, %v612_v49  ;;  %v542_v62 = vadd.f32 %v541_v53, %v1436_v21 }
 0x142   :  { %v676_v11 = vadd.f32 %v675_v61, %v613_v3  ;;  %v543_v22 = vadd.f32 %v1430_v18, %v542_v62  ;;  %v617_v61 = vmul.f32 %v1485_v56, %v1485_v56  ;;  %v1639_v3 = vpop.f32.mrf.mxu1 }
 0x144   :  { %v544_v26 = vadd.f32 %v543_v22, %v1461_v38  ;;  %v677_v34 = vadd.f32 %v676_v11, %v614_v8  ;;  %v618_v22 = vmul.f32 %v1473_v47, %v1473_v47 }
 0x146   :  { %v678_v49 = vadd.f32 %v677_v34, %v615_v30  ;;  %v545_v53 = vadd.f32 %v1449_v29, %v544_v26  ;;  %v619_v30 = vmul.f32 %v1509_v10, %v1509_v10  ;;  %v1647_v34 = vpop.f32.mrf.mxu1 }
 0x148   :  { %v546_v54 = vadd.f32 %v545_v53, %v1485_v56  ;;  %v679_v62 = vadd.f32 %v678_v49, %v616_v43  ;;  %v620_v53 = vmul.f32 %v1497_v1, %v1497_v1 }
 0x14a   :  { %v680_v8 = vadd.f32 %v679_v62, %v617_v61  ;;  %v547_v11 = vadd.f32 %v1473_v47, %v546_v54  ;;  %v621_v61 = vmul.f32 %v1533_v39, %v1533_v39  ;;  %v1655_v62 = vpop.f32.mrf.mxu1 }
 0x14c   :  { %v548_v12 = vadd.f32 %v547_v11, %v1509_v10  ;;  %v681_v26 = vadd.f32 %v680_v8, %v618_v22  ;;  %v622_v11 = vmul.f32 %v1521_v25, %v1521_v25 }
 0x14e   :  { %v682_v43 = vadd.f32 %v681_v26, %v619_v30  ;;  %v549_v49 = vadd.f32 %v1497_v1, %v548_v12  ;;  %v623_v30 = vmul.f32 %v1557_v2, %v1557_v2  ;;  %v1663_v26 = vpop.f32.mrf.mxu1 }
 0x14f   :  { %2119 = vst [vmem:[#allocation27_spill] sm:$0xff] %v1663_v26 }
 0x150   :  { %v550_v9 = vadd.f32 %v549_v49, %v1533_v39  ;;  %v683_v54 = vadd.f32 %v682_v43, %v620_v53  ;;  %v624_v49 = vmul.f32 %v1545_v52, %v1545_v52 }
 0x152   :  { %v684_v22 = vadd.f32 %v683_v54, %v621_v61  ;;  %v551_v8 = vadd.f32 %v1521_v25, %v550_v9  ;;  %v625_v61 = vmul.f32 %v1581_v40, %v1581_v40  ;;  %v1671_v54 = vpop.f32.mrf.mxu1 }
 0x153   :  { %2120 = vst [vmem:[#allocation28_spill] sm:$0xff] %v1671_v54 }
 0x154   :  { %v552_v32 = vadd.f32 %v551_v8, %v1557_v2  ;;  %v685_v12 = vadd.f32 %v684_v22, %v622_v11  ;;  %v626_v8 = vmul.f32 %v1569_v15, %v1569_v15 }
 0x156   :  { %v686_v53 = vadd.f32 %v685_v12, %v623_v30  ;;  %v553_v43 = vadd.f32 %v1545_v52, %v552_v32  ;;  %v627_v30 = vmul.f32 %v1605_v19, %v1605_v19  ;;  %v1679_v12 = vpop.f32.mrf.mxu1 }
 0x157   :  { %2121 = vst [vmem:[#allocation29_spill] sm:$0xff] %v1679_v12 }
 0x158   :  { %v554_v14 = vadd.f32 %v553_v43, %v1581_v40  ;;  %v687_v9 = vadd.f32 %v686_v53, %v624_v49  ;;  %v628_v43 = vmul.f32 %v1593_v59, %v1593_v59 }
 0x15a   :  { %v688_v11 = vadd.f32 %v687_v9, %v625_v61  ;;  %v555_v22 = vadd.f32 %v1569_v15, %v554_v14  ;;  %v629_v61 = vmul.f32 %v1623_v6, %v1623_v6  ;;  %v1687_v9 = vpop.f32.mrf.mxu1 }
 0x15b   :  { %2122 = vst [vmem:[#allocation30_spill] sm:$0xff] %v1687_v9 }
 0x15c   :  { %v556_v57 = vadd.f32 %v555_v22, %v1605_v19  ;;  %v689_v32 = vadd.f32 %v688_v11, %v626_v8  ;;  %v630_v22 = vmul.f32 %v1615_v45, %v1615_v45 }
 0x15e   :  { %v690_v49 = vadd.f32 %v689_v32, %v627_v30  ;;  %v557_v53 = vadd.f32 %v1593_v59, %v556_v57  ;;  %v631_v30 = vmul.f32 %v1639_v3, %v1639_v3  ;;  %v1695_v32 = vpop.f32.mrf.mxu1 }
 0x15f   :  { %2123 = vst [vmem:[#allocation31_spill] sm:$0xff] %v1695_v32 }
 0x160   :  { %v558_v0 = vadd.f32 %v557_v53, %v1623_v6  ;;  %v691_v14 = vadd.f32 %v690_v49, %v628_v43  ;;  %v632_v53 = vmul.f32 %v1631_v41, %v1631_v41 }
 0x162   :  { %v692_v8 = vadd.f32 %v691_v14, %v629_v61  ;;  %v559_v11 = vadd.f32 %v1615_v45, %v558_v0  ;;  %v633_v61 = vmul.f32 %v1655_v62, %v1655_v62  ;;  %v1703_v14 = vpop.f32.mrf.mxu1 }
 0x163   :  { %2124 = vst [vmem:[#allocation32_spill] sm:$0xff] %v1703_v14 }
 0x164   :  { %v560_v4 = vadd.f32 %v559_v11, %v1639_v3  ;;  %v693_v57 = vadd.f32 %v692_v8, %v630_v22  ;;  %v634_v11 = vmul.f32 %v1647_v34, %v1647_v34 }
 0x166   :  { %v694_v43 = vadd.f32 %v693_v57, %v631_v30  ;;  %v561_v49 = vadd.f32 %v1631_v41, %v560_v4  ;;  %v635_v30 = vmul.f32 %v1671_v54, %v1671_v54  ;;  %v1711_v57 = vpop.f32.mrf.mxu1 }
 0x167   :  { %2125 = vst [vmem:[#allocation33_spill] sm:$0xff] %v1711_v57 }
 0x168   :  { %v562_v5 = vadd.f32 %v561_v49, %v1655_v62  ;;  %v695_v0 = vadd.f32 %v694_v43, %v632_v53  ;;  %v636_v49 = vmul.f32 %v1663_v26, %v1663_v26 }
 0x16a   :  { %v696_v22 = vadd.f32 %v695_v0, %v633_v61  ;;  %v563_v8 = vadd.f32 %v1647_v34, %v562_v5  ;;  %v637_v61 = vmul.f32 %v1687_v9, %v1687_v9  ;;  %v1719_v0 = vpop.f32.mrf.mxu1 }
 0x16b   :  { %2126 = vst [vmem:[#allocation34_spill] sm:$0xff] %v1719_v0 }
 0x16c   :  { %v564_v35 = vadd.f32 %v563_v8, %v1671_v54  ;;  %v697_v4 = vadd.f32 %v696_v22, %v634_v11  ;;  %v638_v8 = vmul.f32 %v1679_v12, %v1679_v12 }
 0x16e   :  { %v698_v53 = vadd.f32 %v697_v4, %v635_v30  ;;  %v565_v43 = vadd.f32 %v1663_v26, %v564_v35  ;;  %v639_v30 = vmul.f32 %v1703_v14, %v1703_v14  ;;  %v1727_v4 = vpop.f32.mrf.mxu1 }
 0x170   :  { %v566_v55 = vadd.f32 %v565_v43, %v1687_v9  ;;  %v699_v5 = vadd.f32 %v698_v53, %v636_v49  ;;  %v640_v43 = vmul.f32 %v1695_v32, %v1695_v32 }
 0x172   :  { %v700_v11 = vadd.f32 %v699_v5, %v637_v61  ;;  %v567_v22 = vadd.f32 %v1679_v12, %v566_v55  ;;  %v641_v61 = vmul.f32 %v1719_v0, %v1719_v0  ;;  %v502_v5 = vpop.f32.mrf.mxu1 }
 0x173   :  { %v643_v46 = vmul.f32 %v502_v5, %v502_v5 }
 0x174   :  { %v568_v48 = vadd.f32 %v567_v22, %v1703_v14  ;;  %v701_v35 = vadd.f32 %v700_v11, %v638_v8  ;;  %v642_v22 = vmul.f32 %v1711_v57, %v1711_v57 }
 0x176   :  { %v702_v49 = vadd.f32 %v701_v35, %v639_v30  ;;  %v569_v53 = vadd.f32 %v1695_v32, %v568_v48  ;;  %v644_v30 = vmul.f32 %v1727_v4, %v1727_v4 }
 0x178   :  { %v570_v60 = vadd.f32 %v569_v53, %v1719_v0  ;;  %v703_v55 = vadd.f32 %v702_v49, %v640_v43 }
 0x17a   :  { %v704_v13 = vadd.f32 %v703_v55, %v641_v61  ;;  %v571_v8 = vadd.f32 %v1711_v57, %v570_v60 }
 0x17c   :  { %v572_v11 = vadd.f32 %v571_v8, %v502_v5  ;;  %v705_v27 = vadd.f32 %v704_v13, %v642_v22 }
 0x17e   :  { %v573_v48 = vadd.f32 %v1727_v4, %v572_v11  ;;  %v706_v35 = vadd.f32 %v705_v27, %v643_v46  ;;  %v726_v46 = vlaneseq }
 0x180   :  { %v574_v53 = vrot.slane %v573_v48, 4  ;;  %v707_v59 = vadd.f32 %v706_v35, %v644_v30  ;;  %v727_v27 = vshrl.u32 %v726_v46, 7 }
 0x182   :  { %v575_v0 = vadd.f32 %v574_v53, %v573_v48  ;;  %v708_v43 = vrot.slane %v707_v59, 4 }
 0x184   :  { %v576_v49 = vrot.slane %v575_v0, 2  ;;  %v709_v32 = vadd.f32 %v708_v43, %v707_v59  ;;  %v718_v59 = vld [vmem:[%s2076_s2] sm:$0x1]  ;;  %s1394_s2 = smov [#allocation7]  }
 0x186   :  { %v577_v14 = vadd.f32 %v576_v49, %v575_v0  ;;  %v710_v12 = vrot.slane %v709_v32, 2  ;;  %v728_v0 = vsub.s32 0, %v727_v27 }
 0x188   :  { %v578_v61 = vrot.slane %v577_v14, 1  ;;  %v711_v55 = vadd.f32 %v710_v12, %v709_v32  ;;  %v722_v12 = vld [vmem:[%s2077_s3] sm:$0x1]  ;;  %s1067_s3 = sshll.u32 %s1394_s2, 4  ;;  %s1068_s3 = int_to_ptr.vmem [resolvable:$true] %s1067_s3 }
 0x189   :  { %s1364_s29 = scalar_lea.vmem %s1068_s3, 512  ;;  %p1369_p11 = scmp.lt.s32.totalorder %s1068_s3, %s1068_s3 }
 0x18a   :  { %v579_v60 = vadd.f32 %v578_v61, %v577_v14  ;;  %v712_v8 = vrot.slane %v711_v55, 1  ;;  %p1365_p10 = scmp.ne.s32.totalorder %s1068_s3, %s1364_s29  ;;  %p1370_p12 = scmp.lt.s32.totalorder %s1364_s29, %s1364_s29 }
 0x18c   :  { %v580_v57 = vmul.f32 0.001953125, %v579_v60  ;;  %v713_v13 = vadd.f32 %v712_v8, %v711_v55  ;;  %p1371_p13 = por %p1370_p12, %p1369_p11 }
 0x18e   :  { %v714_v22 = vmul.f32 0.001953125, %v713_v13  ;;  %v715_v9 = vmul.f32 %v580_v57, %v580_v57  ;;  %p1372_p0 = pnand %p1371_p13, %p1365_p10 }
 0x190   :  { %v716_v26 = vsub.f32 %v714_v22, %v715_v9 }
 0x192   :  { %v717_v54 = vmax.f32 %v716_v26, 0.0 }
 0x194   :  { %v719_v11 = vadd.f32 1e-05, %v717_v54 }
 0x196   :  { %1322 = vrsqrt.f32 %v719_v11 }
 0x1a3   :  { %v1323_v30 = vpop.eup %1322 }
 0x1a4   :  { %v721_v48 = vmul.f32 %v1323_v30, %v718_v59 }
 0x1a6   :  { %v723_v32 = vmul.f32 %v721_v48, %v580_v57  ;;  %v1747_v14 = vrot.slane %v721_v48, %v728_v0 }
 0x1a8   :  { %v724_v9 = vsub.f32 %v722_v12, %v723_v32  ;;  %v793_v26 = vmul.f32 %v1747_v14, %v502_v5  ;;  %v747_v53 = vmul.f32 %v1747_v14, %v1526_v31  ;;  %v731_v43 = vmul.f32 %v1747_v14, %v1428_v17 }
 0x1a9   :  { %v732_v49 = vmul.f32 %v1426_v16, %v1747_v14  ;;  %v748_v57 = vmul.f32 %v1519_v23, %v1747_v14  ;;  %v733_v55 = vmul.f32 %v1747_v14, %v1442_v24  ;;  %v734_v60 = vmul.f32 %v1434_v20, %v1747_v14 }
 0x1aa   :  { %v1750_v54 = vrot.slane %v724_v9, %v728_v0  ;;  %v735_v31 = vmul.f32 %v1747_v14, %v1454_v33  ;;  %v1775_v23 = vmul.f32 %v1447_v28, %v1747_v14  ;;  %v1779_v22 = vmul.f32 %v1747_v14, %v1466_v42  ;;  %v2127_v9 = vld [vmem:[#allocation28_spill] sm:$0xff] }
 0x1ab   :  { %v1783_v20 = vmul.f32 %v1459_v37, %v1747_v14  ;;  %v1787_v24 = vmul.f32 %v1747_v14, %v1478_v51  ;;  %v749_v33 = vmul.f32 %v1747_v14, %v1538_v44  ;;  %v750_v11 = vmul.f32 %v1531_v36, %v1747_v14 }
 0x1ac   :  { %v1753_v35 = vadd.f32 %v1750_v54, %v793_v26  ;;  %v817_v61 = vadd.f32 %v1750_v54, %v747_v53  ;;  %v801_v5 = vadd.f32 %v1750_v54, %v731_v43  ;;  %v818_v16 = vadd.f32 %v1750_v54, %v748_v57 }
 0x1ad   :  { %v802_v13 = vadd.f32 %v1750_v54, %v732_v49  ;;  %v751_v28 = vmul.f32 %v1747_v14, %v1550_v58  ;;  %v752_v42 = vmul.f32 %v1543_v50, %v1747_v14  ;;  %v1799_v37 = vmul.f32 %v1747_v14, %v1562_v7 }
 0x1ae   :  { %v881_v17 = vmax.f32 %v817_v61, 0.0  ;;  %v865_v8 = vmax.f32 %v801_v5, 0.0  ;;  %v1803_v51 = vmul.f32 %v1555_v63, %v1747_v14  ;;  %v763_v44 = vmul.f32 %v1747_v14, %v1436_v21 }
 0x1af   :  { %v882_v36 = vmax.f32 %v818_v16, 0.0  ;;  %v866_v46 = vmax.f32 %v802_v13, 0.0  ;;  %v819_v58 = vadd.f32 %v1750_v54, %v749_v33  ;;  %v803_v27 = vadd.f32 %v1750_v54, %v733_v55  ;;  %v2128_v55 = vld [vmem:[#allocation27_spill] sm:$0xff] }
 0x1b0   :  { %961 = vxpose.xlu1.b32.start [1/16] (narrow) %v881_v17, 8  ;;  %929 = vxpose.xlu0.b32.start [1/16] (narrow) %v865_v8, 8  ;;  %v764_v50 = vmul.f32 %v1430_v18, %v1747_v14  ;;  %v765_v7 = vmul.f32 %v1747_v14, %v1461_v38  ;;  %v766_v59 = vmul.f32 %v1449_v29, %v1747_v14  ;;  %v2130_v8 = vld [vmem:[#allocation29_spill] sm:$0xff] }
 0x1b1   :  { %v767_v63 = vmul.f32 %v1747_v14, %v1485_v56  ;;  %v768_v21 = vmul.f32 %v1473_v47, %v1747_v14  ;;  %v769_v0 = vmul.f32 %v1747_v14, %v1509_v10  ;;  %v770_v30 = vmul.f32 %v1497_v1, %v1747_v14 }
 0x1b2   :  { %v771_v18 = vmul.f32 %v1747_v14, %v1533_v39  ;;  %v772_v29 = vmul.f32 %v1521_v25, %v1747_v14  ;;  %v1829_v38 = vmul.f32 %v1747_v14, %v1557_v2  ;;  %v820_v47 = vadd.f32 %v1750_v54, %v750_v11 }
 0x1b3   :  { %v1834_v56 = vmul.f32 %v1545_v52, %v1747_v14  ;;  %v883_v10 = vmax.f32 %v819_v58, 0.0  ;;  %v867_v1 = vmax.f32 %v803_v27, 0.0  ;;  %v804_v48 = vadd.f32 %v1750_v54, %v734_v60 }
 0x1b4   :  { %962 = vxpose.xlu1.b32.cont [2/16] (narrow) %v882_v36, 8  ;;  %930 = vxpose.xlu0.b32.cont [2/16] (narrow) %v866_v46, 8  ;;  %v1839_v39 = vmul.f32 %v1747_v14, %v1581_v40  ;;  %v1843_v25 = vmul.f32 %v1569_v15, %v1747_v14  ;;  %v1847_v2 = vmul.f32 %v1747_v14, %v1605_v19  ;;  %v884_v26 = vmax.f32 %v820_v47, 0.0  ;;  %v2133_v47 = vld [vmem:[#allocation34_spill] sm:$0xff] }
 0x1b5   :  { %v779_v52 = vmul.f32 %v1747_v14, %v1623_v6  ;;  %v780_v12 = vmul.f32 %v1615_v45, %v1747_v14  ;;  %v781_v32 = vmul.f32 %v1747_v14, %v1639_v3  ;;  %v782_v40 = vmul.f32 %v1631_v41, %v1747_v14 }
 0x1b6   :  { %v783_v15 = vmul.f32 %v1747_v14, %v1655_v62  ;;  %v784_v19 = vmul.f32 %v1647_v34, %v1747_v14  ;;  %v785_v6 = vmul.f32 %v1747_v14, %v2127_v9  ;;  %v868_v53 = vmax.f32 %v804_v48, 0.0  ;;  %v2135_v9 = vld [vmem:[#allocation33_spill] sm:$0xff] }
 0x1b7   :  { %v821_v45 = vadd.f32 %v1750_v54, %v751_v28  ;;  %v805_v3 = vadd.f32 %v1750_v54, %v735_v31  ;;  %v1866_v43 = vadd.f32 %v1750_v54, %v779_v52  ;;  %v1869_v41 = vadd.f32 %v1750_v54, %v763_v44  ;;  %v2129_v31 = vld [vmem:[#allocation30_spill] sm:$0xff] }
 0x1b8   :  { %963 = vxpose.xlu1.b32.cont [3/16] (narrow) %v883_v10, 8  ;;  %931 = vxpose.xlu0.b32.cont [3/16] (narrow) %v867_v1, 8  ;;  %v1872_v62 = vadd.f32 %v1750_v54, %v780_v12  ;;  %v1875_v34 = vadd.f32 %v1750_v54, %v764_v50  ;;  %v1878_v49 = vadd.f32 %v1750_v54, %v781_v32 }
 0x1b9   :  { %v1881_v57 = vadd.f32 %v1750_v54, %v765_v7  ;;  %v1884_v61 = vadd.f32 %v1750_v54, %v782_v40  ;;  %v1887_v5 = vadd.f32 %v1750_v54, %v766_v59  ;;  %v786_v60 = vmul.f32 %v2128_v55, %v1747_v14  ;;  %v2131_v7 = vld [vmem:[#allocation32_spill] sm:$0xff]  ;;  %v2136_v55 = vld [vmem:[#allocation19_spill] sm:$0xff] }
 0x1ba   :  { %v787_v17 = vmul.f32 %v1747_v14, %v2129_v31  ;;  %v788_v16 = vmul.f32 %v2130_v8, %v1747_v14  ;;  %v822_v13 = vadd.f32 %v1750_v54, %v752_v42  ;;  %v885_v33 = vmax.f32 %v821_v45, 0.0 }
 0x1bb   :  { %v869_v11 = vmax.f32 %v805_v3, 0.0  ;;  %v806_v28 = vadd.f32 %v1750_v54, %v1775_v23  ;;  %v1899_v44 = vadd.f32 %v1750_v54, %v783_v15  ;;  %v1902_v36 = vadd.f32 %v1750_v54, %v767_v63  ;;  %v2132_v63 = vld [vmem:[#allocation31_spill] sm:$0xff] }
 0x1bc   :  { %964 = vxpose.xlu1.b32.cont [4/16] (narrow) %v884_v26, 8  ;;  %932 = vxpose.xlu0.b32.cont [4/16] (narrow) %v868_v53, 8  ;;  %v1905_v46 = vadd.f32 %v1750_v54, %v784_v19  ;;  %v1908_v58 = vadd.f32 %v1750_v54, %v768_v21  ;;  %v1911_v27 = vadd.f32 %v1750_v54, %v785_v6  ;;  %v2134_v19 = vld [vmem:[#allocation23_spill] sm:$0xff] }
 0x1bd   :  { %v1914_v42 = vadd.f32 %v1750_v54, %v769_v0  ;;  %v1917_v23 = vadd.f32 %v1750_v54, %v786_v60  ;;  %v1920_v50 = vadd.f32 %v1750_v54, %v770_v30  ;;  %v789_v59 = vmul.f32 %v1747_v14, %v2131_v7 }
 0x1be   :  { %v790_v21 = vmul.f32 %v2132_v63, %v1747_v14  ;;  %v791_v10 = vmul.f32 %v1747_v14, %v2133_v47  ;;  %v823_v1 = vadd.f32 %v1750_v54, %v1799_v37  ;;  %v886_v0 = vmax.f32 %v822_v13, 0.0  ;;  %v2139_v47 = vld [vmem:[#allocation13_spill] sm:$0xff] }
 0x1bf   :  { %v870_v48 = vmax.f32 %v806_v28, 0.0  ;;  %v807_v52 = vadd.f32 %v1750_v54, %v1779_v22  ;;  %v1933_v30 = vadd.f32 %v1750_v54, %v787_v17  ;;  %v1936_v12 = vadd.f32 %v1750_v54, %v771_v18  ;;  %v2138_v28 = vld [vmem:[#allocation18_spill] sm:$0xff] }
 0x1c0   :  { %965 = vxpose.xlu1.b32.cont [5/16] (narrow) %v885_v33, 8  ;;  %933 = vxpose.xlu0.b32.cont [5/16] (narrow) %v869_v11, 8  ;;  %v1939_v32 = vadd.f32 %v1750_v54, %v788_v16  ;;  %v1942_v40 = vadd.f32 %v1750_v54, %v772_v29  ;;  %v1945_v15 = vadd.f32 %v1750_v54, %v789_v59  ;;  %v887_v53 = vmax.f32 %v823_v1, 0.0  ;;  %v2137_v33 = vld [vmem:[#allocation11_spill] sm:$0xff]  ;;  %v2140_v1 = vld [vmem:[#allocation21_spill] sm:$0xff] }
 0x1c1   :  { %v1949_v22 = vadd.f32 %v1750_v54, %v1829_v38  ;;  %v1952_v37 = vadd.f32 %v1750_v54, %v790_v21  ;;  %v1956_v18 = vadd.f32 %v1750_v54, %v1834_v56  ;;  %v778_v29 = vmul.f32 %v2134_v19, %v1747_v14 }
 0x1c2   :  { %v792_v6 = vmul.f32 %v2135_v9, %v1747_v14  ;;  %v794_v26 = vmul.f32 %v1727_v4, %v1747_v14  ;;  %v824_v38 = vadd.f32 %v1750_v54, %v1803_v51  ;;  %v871_v45 = vmax.f32 %v807_v52, 0.0 }
 0x1c3   :  { %v808_v3 = vadd.f32 %v1750_v54, %v1783_v20  ;;  %v1969_v56 = vadd.f32 %v1750_v54, %v791_v10  ;;  %v755_v60 = vmul.f32 %v1747_v14, %v2136_v55  ;;  %v1975_v31 = vadd.f32 %v1750_v54, %v1839_v39  ;;  %v2143_v55 = vld [vmem:[#allocation15_spill] sm:$0xff] }
 0x1c4   :  { %966 = vxpose.xlu1.b32.cont [6/16] (narrow) %v886_v0, 8  ;;  %934 = vxpose.xlu0.b32.cont [6/16] (narrow) %v870_v48, 8  ;;  %v1978_v4 = vadd.f32 %v1750_v54, %v792_v6  ;;  %v1982_v51 = vadd.f32 %v1750_v54, %v1843_v25  ;;  %v1986_v20 = vadd.f32 %v1750_v54, %v1847_v2  ;;  %v888_v39 = vmax.f32 %v824_v38, 0.0  ;;  %v2142_v6 = vld [vmem:[#allocation20_spill] sm:$0xff] }
 0x1c5   :  { %v1989_v17 = vadd.f32 %v1750_v54, %v794_v26  ;;  %v1992_v8 = vadd.f32 %v1750_v54, %v778_v29  ;;  %v872_v16 = vmax.f32 %v808_v3, 0.0  ;;  %v825_v13 = vadd.f32 %v1750_v54, %v755_v60  ;;  %v2141_v29 = vld [vmem:[#allocation12_spill] sm:$0xff] }
 0x1c6   :  { %v809_v25 = vadd.f32 %v1750_v54, %v1787_v24  ;;  %v740_v11 = vmul.f32 %v2137_v33, %v1747_v14  ;;  %v756_v2 = vmul.f32 %v2138_v28, %v1747_v14  ;;  %v741_v10 = vmul.f32 %v1747_v14, %v2139_v47  ;;  %v2145_v28 = vld [vmem:[#allocation14_spill] sm:$0xff] }
 0x1c7   :  { %v889_v7 = vmax.f32 %v825_v13, 0.0  ;;  %v757_v24 = vmul.f32 %v1747_v14, %v2140_v1  ;;  %v742_v9 = vmul.f32 %v2141_v29, %v1747_v14  ;;  %v758_v26 = vmul.f32 %v2142_v6, %v1747_v14  ;;  %v2147_v1 = vld [vmem:[#allocation17_spill] sm:$0xff]  ;;  %v2149_v6 = vld [vmem:[#allocation16_spill] sm:$0xff] }
 0x1c8   :  { %967 = vxpose.xlu1.b32.cont [7/16] (narrow) %v887_v53, 8  ;;  %935 = vxpose.xlu0.b32.cont [7/16] (narrow) %v871_v45, 8  ;;  %v873_v59 = vmax.f32 %v809_v25, 0.0  ;;  %v826_v63 = vadd.f32 %v1750_v54, %v756_v2  ;;  %v810_v21 = vadd.f32 %v1750_v54, %v740_v11  ;;  %v811_v19 = vadd.f32 %v1750_v54, %v741_v10 }
 0x1c9   :  { %v827_v52 = vadd.f32 %v1750_v54, %v757_v24  ;;  %v828_v45 = vadd.f32 %v1750_v54, %v758_v26  ;;  %v812_v3 = vadd.f32 %v1750_v54, %v742_v9  ;;  %v743_v60 = vmul.f32 %v1747_v14, %v2143_v55 }
 0x1ca   :  { %v890_v0 = vmax.f32 %v826_v63, 0.0  ;;  %v874_v48 = vmax.f32 %v810_v21, 0.0  ;;  %v875_v53 = vmax.f32 %v811_v19, 0.0  ;;  %v744_v2 = vmul.f32 %v2145_v28, %v1747_v14 }
 0x1cb   :  { %v891_v38 = vmax.f32 %v827_v52, 0.0  ;;  %v892_v13 = vmax.f32 %v828_v45, 0.0  ;;  %v876_v25 = vmax.f32 %v812_v3, 0.0  ;;  %v813_v11 = vadd.f32 %v1750_v54, %v743_v60 }
 0x1cc   :  { %968 = vxpose.xlu1.b32.cont [8/16] (narrow) %v888_v39, 8  ;;  %936 = vxpose.xlu0.b32.cont [8/16] (narrow) %v872_v16, 8  ;;  %v2144_v39 = vld [vmem:[#allocation24_spill] sm:$0xff]  ;;  %v814_v10 = vadd.f32 %v1750_v54, %v744_v2  ;;  %v745_v24 = vmul.f32 %v1747_v14, %v2147_v1  ;;  %v746_v26 = vmul.f32 %v2149_v6, %v1747_v14  ;;  %v916_v28 = vmax.f32 %v1884_v61, 0.0 }
 0x1cd   :  { %v759_v16 = vmul.f32 %v1747_v14, %v2144_v39  ;;  %v877_v21 = vmax.f32 %v813_v11, 0.0  ;;  %v899_v11 = vmax.f32 %v1881_v57, 0.0  ;;  %v919_v57 = vmax.f32 %v1911_v27, 0.0 }
 0x1ce   :  { %v878_v19 = vmax.f32 %v814_v10, 0.0  ;;  %v815_v9 = vadd.f32 %v1750_v54, %v745_v24  ;;  %v816_v60 = vadd.f32 %v1750_v54, %v746_v26  ;;  %v903_v61 = vmax.f32 %v1914_v42, 0.0 }
 0x1cf   :  { %v829_v33 = vadd.f32 %v1750_v54, %v759_v16  ;;  %v906_v27 = vmax.f32 %v1942_v40, 0.0  ;;  %v923_v42 = vmax.f32 %v1945_v15, 0.0  ;;  %v926_v40 = vmax.f32 %v1978_v4, 0.0 }
 0x1d0   :  { %969 = vxpose.xlu1.b32.cont [9/16] (narrow) %v889_v7, 8  ;;  %937 = vxpose.xlu0.b32.cont [9/16] (narrow) %v873_v59, 8  ;;  %v2146_v7 = vld [vmem:[#allocation22_spill] sm:$0xff]  ;;  %v879_v3 = vmax.f32 %v815_v9, 0.0  ;;  %v880_v16 = vmax.f32 %v816_v60, 0.0  ;;  %v910_v15 = vmax.f32 %v1982_v51, 0.0 }
 0x1d1   :  { %v760_v59 = vmul.f32 %v2146_v7, %v1747_v14  ;;  %v893_v63 = vmax.f32 %v829_v33, 0.0  ;;  %v898_v33 = vmax.f32 %v1875_v34, 0.0  ;;  %v918_v34 = vmax.f32 %v1905_v46, 0.0 }
 0x1d2   :  { %v905_v46 = vmax.f32 %v1936_v12, 0.0  ;;  %v925_v12 = vmax.f32 %v1969_v56, 0.0  ;;  %v912_v56 = vmax.f32 %v1992_v8, 0.0 }
 0x1d3   :  { %v830_v47 = vadd.f32 %v1750_v54, %v760_v59 }
 0x1d4   :  { %970 = vxpose.xlu1.b32.cont [10/16] (narrow) %v890_v0, 8  ;;  %938 = vxpose.xlu0.b32.cont [10/16] (narrow) %v874_v48, 8  ;;  %v2148_v0 = vld [vmem:[#allocation26_spill] sm:$0xff] }
 0x1d5   :  { %v761_v48 = vmul.f32 %v1747_v14, %v2148_v0  ;;  %v894_v52 = vmax.f32 %v830_v47, 0.0 }
 0x1d7   :  { %v831_v29 = vadd.f32 %v1750_v54, %v761_v48 }
 0x1d8   :  { %971 = vxpose.xlu1.b32.cont [11/16] (narrow) %v891_v38, 8  ;;  %939 = vxpose.xlu0.b32.cont [11/16] (narrow) %v875_v53, 8  ;;  %v2150_v38 = vld [vmem:[#allocation25_spill] sm:$0xff] }
 0x1d9   :  { %v762_v53 = vmul.f32 %v2150_v38, %v1747_v14  ;;  %v895_v45 = vmax.f32 %v831_v29, 0.0  ;;  %v914_v14 = vmax.f32 %v1872_v62, 0.0  ;;  %v901_v62 = vmax.f32 %v1902_v36, 0.0 }
 0x1da   :  { %v921_v36 = vmax.f32 %v1933_v30, 0.0  ;;  %v908_v30 = vmax.f32 %v1956_v18, 0.0  ;;  %v928_v18 = vmax.f32 %v1989_v17, 0.0 }
 0x1db   :  { %v832_v55 = vadd.f32 %v1750_v54, %v762_v53  ;;  %v915_v54 = vmax.f32 %v1878_v49, 0.0  ;;  %v902_v49 = vmax.f32 %v1908_v58, 0.0  ;;  %v922_v58 = vmax.f32 %v1939_v32, 0.0 }
 0x1dc   :  { %972 = vxpose.xlu1.b32.cont [12/16] (narrow) %v892_v13, 8  ;;  %940 = vxpose.xlu0.b32.cont [12/16] (narrow) %v876_v25, 8  ;;  %v913_v13 = vmax.f32 %v1866_v43, 0.0  ;;  %v897_v25 = vmax.f32 %v1869_v41, 0.0  ;;  %v900_v43 = vmax.f32 %v1887_v5, 0.0  ;;  %v917_v41 = vmax.f32 %v1899_v44, 0.0 }
 0x1dd   :  { %v896_v39 = vmax.f32 %v832_v55, 0.0  ;;  %v920_v5 = vmax.f32 %v1917_v23, 0.0  ;;  %v904_v44 = vmax.f32 %v1920_v50, 0.0  ;;  %v907_v23 = vmax.f32 %v1949_v22, 0.0 }
 0x1de   :  { %v924_v50 = vmax.f32 %v1952_v37, 0.0  ;;  %v909_v32 = vmax.f32 %v1975_v31, 0.0  ;;  %v927_v22 = vmax.f32 %v1753_v35, 0.0  ;;  %v911_v37 = vmax.f32 %v1986_v20, 0.0 }
 0x1e0   :  { %973 = vxpose.xlu1.b32.cont [13/16] (narrow) %v893_v63, 8  ;;  %941 = vxpose.xlu0.b32.cont [13/16] (narrow) %v877_v21, 8 }
 0x1e4   :  { %974 = vxpose.xlu1.b32.cont [14/16] (narrow) %v894_v52, 8  ;;  %942 = vxpose.xlu0.b32.cont [14/16] (narrow) %v878_v19, 8 }
 0x1e8   :  { %975 = vxpose.xlu1.b32.cont [15/16] (narrow) %v895_v45, 8  ;;  %943 = vxpose.xlu0.b32.cont [15/16] (narrow) %v879_v3, 8 }
 0x1ec   :  { %976 = vxpose.xlu1.b32.end [16/16] (narrow) %v896_v39, 8  ;;  %944 = vxpose.xlu0.b32.end [16/16] (narrow) %v880_v16, 8 }
 0x1f0   :  { %1025 = vxpose.xlu1.b32.start [1/16] (narrow) %v913_v13, 8  ;;  %993 = vxpose.xlu0.b32.start [1/16] (narrow) %v897_v25, 8 }
 0x1f4   :  { %1026 = vxpose.xlu1.b32.cont [2/16] (narrow) %v914_v14, 8  ;;  %994 = vxpose.xlu0.b32.cont [2/16] (narrow) %v898_v33, 8 }
 0x1f8   :  { %1027 = vxpose.xlu1.b32.cont [3/16] (narrow) %v915_v54, 8  ;;  %995 = vxpose.xlu0.b32.cont [3/16] (narrow) %v899_v11, 8 }
 0x1fc   :  { %1028 = vxpose.xlu1.b32.cont [4/16] (narrow) %v916_v28, 8  ;;  %996 = vxpose.xlu0.b32.cont [4/16] (narrow) %v900_v43, 8 }
 0x200   :  { %1029 = vxpose.xlu1.b32.cont [5/16] (narrow) %v917_v41, 8  ;;  %997 = vxpose.xlu0.b32.cont [5/16] (narrow) %v901_v62, 8 }
 0x204   :  { %1030 = vxpose.xlu1.b32.cont [6/16] (narrow) %v918_v34, 8  ;;  %998 = vxpose.xlu0.b32.cont [6/16] (narrow) %v902_v49, 8 }
 0x208   :  { %1031 = vxpose.xlu1.b32.cont [7/16] (narrow) %v919_v57, 8  ;;  %999 = vxpose.xlu0.b32.cont [7/16] (narrow) %v903_v61, 8 }
 0x20c   :  { %1032 = vxpose.xlu1.b32.cont [8/16] (narrow) %v920_v5, 8  ;;  %1000 = vxpose.xlu0.b32.cont [8/16] (narrow) %v904_v44, 8 }
 0x210   :  { %1033 = vxpose.xlu1.b32.cont [9/16] (narrow) %v921_v36, 8  ;;  %1001 = vxpose.xlu0.b32.cont [9/16] (narrow) %v905_v46, 8 }
 0x214   :  { %1034 = vxpose.xlu1.b32.cont [10/16] (narrow) %v922_v58, 8  ;;  %1002 = vxpose.xlu0.b32.cont [10/16] (narrow) %v906_v27, 8 }
 0x218   :  { %1035 = vxpose.xlu1.b32.cont [11/16] (narrow) %v923_v42, 8  ;;  %1003 = vxpose.xlu0.b32.cont [11/16] (narrow) %v907_v23, 8 }
 0x21c   :  { %1036 = vxpose.xlu1.b32.cont [12/16] (narrow) %v924_v50, 8  ;;  %1004 = vxpose.xlu0.b32.cont [12/16] (narrow) %v908_v30, 8 }
 0x220   :  { %1037 = vxpose.xlu1.b32.cont [13/16] (narrow) %v925_v12, 8  ;;  %1005 = vxpose.xlu0.b32.cont [13/16] (narrow) %v909_v32, 8 }
 0x224   :  { %1038 = vxpose.xlu1.b32.cont [14/16] (narrow) %v926_v40, 8  ;;  %1006 = vxpose.xlu0.b32.cont [14/16] (narrow) %v910_v15, 8 }
 0x228   :  { %1039 = vxpose.xlu1.b32.cont [15/16] (narrow) %v927_v22, 8  ;;  %1007 = vxpose.xlu0.b32.cont [15/16] (narrow) %v911_v37, 8 }
 0x22c   :  { %1040 = vxpose.xlu1.b32.end [16/16] (narrow) %v928_v18, 8  ;;  %1008 = vxpose.xlu0.b32.end [16/16] (narrow) %v912_v56, 8  ;;  %v977_v31 = vpop.trf.xlu1  ;;  %v945_v2 = vpop.trf.xlu0 }
 0x22d   :  { %1058 = vst [vmem:[#allocation7 + $0x8] sm:$0xff] %v977_v31  ;;  %1057 = vst [vmem:[#allocation7] sm:$0xff] %v945_v2 }
 0x26c   :  { %v1041_v4 = vpop.trf.xlu1  ;;  %v1009_v51 = vpop.trf.xlu0 }
 0x26d   :  { %1060 = vst [vmem:[#allocation7 + $0x18] sm:$0xff] %v1041_v4  ;;  %1059 = vst [vmem:[#allocation7 + $0x10] sm:$0xff] %v1009_v51 }
 0x26e   :  { %1375 = shalt.err (!%p1372_p0)
}
 0x26f   :  { %1070 = dma.vmem_to_hbm [thread:$0]  %s1068_s3, 512, %s2078_s4, [#allocation4]  }
 0x270   :  { %1388 = dma.done.wait [#allocation4], 512  }
 0x271   :  { %1389 = vsyncadd [#allocation4], 4294966784 }
 0x272   :  { %1074 = vsyncpa [#allocation3], 1 }
 0x273   :  { %1075 = vsyncpa [#allocation6], 1 }
 0x274   :  { %1076 = vsyncpa [#allocation4], 1 }

</bundles_post_ra>
